<compile_context>
chip_gen: v7x
topology: tpu7x:2x2x1
jax: 0.10.0
libtpu: 0.0.40
codegen_flags: <defaults>
</compile_context>

<pallas_src>
import jax
import jax.numpy as jnp
from jax.experimental import pallas as pl
from jax.experimental.pallas import tpu as pltpu

_MXU_MAX_C = 1024  # above this, O(C^2) MXU flops stop being free -> log-scan


def _onehot_from_cdf(u_ref, out_ref, cs):
    """Shared tail: threshold the inclusive CDF `cs` and emit a one-hot row."""
    tb, c = cs.shape
    total = cs[:, c - 1:c]                 # exact row mass as summed inside cs
    thr = u_ref[...] * total               # u in (0, 1]  ->  thr in (0, total]
    # Winning class = number of lanes with cdf < thr.  cs is non-decreasing for
    # p >= 0, so this is exactly the first CDF crossing; zero-probability
    # classes (cs[c] == cs[c-1]) can never win.  All-zero rows pick class 0,
    # but only padded batch rows can be all-zero and those are sliced off.
    lt = (cs < thr).astype(jnp.float32)    # thr broadcast exactly once
    idx = jnp.sum(lt, axis=-1, keepdims=True).astype(jnp.int32)
    lane = jax.lax.broadcasted_iota(jnp.int32, (tb, c), 1)
    out_ref[...] = jnp.where(lane == idx, 1.0, 0.0).astype(out_ref.dtype)


def _multinomial_mxu_kernel(u_ref, probs_ref, tri_ref, out_ref):
    # Inclusive class-axis prefix sum on the (otherwise idle) MXU:
    #   cs[:, c] = sum_{k <= c} p[:, k]   via   cs = p @ triu(ones)
    cs = jnp.dot(probs_ref[...], tri_ref[...], preferred_element_type=jnp.float32)
    _onehot_from_cdf(u_ref, out_ref, cs)


def _multinomial_scan_kernel(u_ref, probs_ref, out_ref):
    # Fallback for large C: log2(C) roll-and-add scan (XLU roll co-issues with
    # the VPU adds/selects; no concat/slice VMEM temporaries).
    # TODO(synk): for very large C a two-level scan (intra-128-lane rolls plus a
    # per-128-block carry pass) would cut the XLU work further.
    p = probs_ref[...]
    tb, c = p.shape
    lane = jax.lax.broadcasted_iota(jnp.int32, (tb, c), 1)   # hoisted mask source
    cs = p
    shift = 1
    while shift < c:
        rolled = pltpu.roll(cs, shift, axis=1)
        cs = cs + jnp.where(lane >= shift, rolled, 0.0)
        shift *= 2
    _onehot_from_cdf(u_ref, out_ref, cs)


def _round_up(x, m):
    return ((x + m - 1) // m) * m


def _choose_row_tile(B, C):
    """Row tile targeting >= ~4 MiB of input per grid step, VMEM-bounded."""
    Bp = _round_up(B, 8)
    row_bytes = C * 4
    target = max(8, (4 * 1024 * 1024) // row_bytes)        # >= ~4 MiB in per step
    cap = max(8, (24 * 1024 * 1024) // (8 * row_bytes))    # ~8 live tiles < 24 MiB
    tb = max(8, (min(target, cap) // 8) * 8)
    if tb >= Bp:
        return Bp, Bp, 1
    n = -(-Bp // tb)
    if n > 1 and n % 2 == 1:
        # best-effort even tile count so v7x's two TensorCores stay balanced
        tb = max(8, _round_up(-(-Bp // (n + 1)), 8))
        n = -(-Bp // tb)
    return tb, Bp, n


def multinomial_sampler(probs, key):
    """JAX/Pallas equivalent of MultinomialSampler.forward.

    probs: (B, C) array of non-negative (unnormalized) categorical weights.
    key  : jax.random key driving the draws.
    Returns a (B, C) float32 one-hot of one multinomial sample per row.
    """
    probs = jnp.asarray(probs, jnp.float32)
    B, C = probs.shape
    TB, Bp, n_tiles = _choose_row_tile(B, C)

    # Batch padded only to a multiple of 8 (and only when needed); the class
    # axis is never padded.
    probs_in = probs if Bp == B else jnp.pad(probs, ((0, Bp - B), (0, 0)))
    # One uniform threshold per row, in (0, 1].
    u = 1.0 - jax.random.uniform(key, (Bp, 1), dtype=jnp.float32)

    use_mxu = C <= _MXU_MAX_C
    tile_bytes = TB * C * 4
    tri_bytes = C * C * 4 if use_mxu else 0
    vmem_limit = int(min(48 * 1024 * 1024,
                         max(16 * 1024 * 1024,
                             8 * tile_bytes + 2 * tri_bytes + (2 << 20))))
    cparams = pltpu.CompilerParams(
        dimension_semantics=("parallel",),     # shard row tiles across v7x's 2 TCs
        vmem_limit_bytes=vmem_limit,
    )

    u_spec = pl.BlockSpec((TB, 1), lambda i: (i, 0))
    row_spec = pl.BlockSpec((TB, C), lambda i: (i, 0))     # full-C (unpadded) blocks
    out_spec = pl.BlockSpec((TB, C), lambda i: (i, 0))
    out_shape = jax.ShapeDtypeStruct((Bp, C), jnp.float32)

    if use_mxu:
        tri = jnp.triu(jnp.ones((C, C), jnp.float32))      # tri[k, c] = 1 for k <= c
        out = pl.pallas_call(
            _multinomial_mxu_kernel,
            out_shape=out_shape,
            grid=(n_tiles,),
            in_specs=[u_spec, row_spec,
                      pl.BlockSpec((C, C), lambda i: (0, 0))],  # VMEM-resident tri
            out_specs=out_spec,
            compiler_params=cparams,
        )(u, probs_in, tri)
    else:
        out = pl.pallas_call(
            _multinomial_scan_kernel,
            out_shape=out_shape,
            grid=(n_tiles,),
            in_specs=[u_spec, row_spec],
            out_specs=out_spec,
            compiler_params=cparams,
        )(u, probs_in)

    # TODO(synk): torch F.one_hot infers num_classes = max(sample)+1 (a
    # data-dependent output shape); we return the static num_classes = C instead.
    return out if Bp == B else out[:B]


if __name__ == "__main__":
    key = jax.random.PRNGKey(0)
    k_probs, k_sample = jax.random.split(key)

    B, C = 8, 16
    raw = jax.random.uniform(k_probs, (B, C), dtype=jnp.float32, minval=0.1, maxval=1.0)
    probs = raw / jnp.sum(raw, axis=-1, keepdims=True)

    out = multinomial_sampler(probs, k_sample)
    out = jax.block_until_ready(out)

    # Sanity: valid one-hot rows of the right shape/dtype, sampled class has p > 0.
    assert out.shape == (B, C)
    assert out.dtype == jnp.float32
    assert bool(jnp.all(jnp.sum(out, axis=-1) == 1.0)), "each row must be one-hot"
    assert bool(jnp.all((out == 0.0) | (out == 1.0)))
    assert bool(jnp.all(jnp.sum(out * probs, axis=-1) > 0.0))

    print("KERNEL_OK")
</pallas_src>

<mosaic_0001>
module attributes {stable_mosaic.version = 11 : i64} {
  func.func @_multinomial_mxu_kernel(%arg0: i32, %arg1: memref<8x1xf32, #tpu.memory_space<vmem>>, %arg2: memref<8x16xf32, #tpu.memory_space<vmem>>, %arg3: memref<16x16xf32, #tpu.memory_space<vmem>>, %arg4: memref<8x16xf32, #tpu.memory_space<vmem>>) attributes {dimension_semantics = [#tpu.dimension_semantics<parallel>], iteration_bounds = array<i64: 1>, scalar_prefetch = 0 : i64, scratch_operands = 0 : i64, tpu.core_type = #tpu.core_type<tc>, window_params = [{transform_indices = @transform_0, window_bounds = array<i64: 8, 1>}, {transform_indices = @transform_1, window_bounds = array<i64: 8, 16>}, {pipeline_mode = #tpu.pipeline_mode<synchronous>, transform_indices = @transform_2, window_bounds = array<i64: 16, 16>}, {transform_indices = @transform_3, window_bounds = array<i64: 8, 16>}]} {
    %c0 = arith.constant 0 : index
    %c0_0 = arith.constant 0 : index
    %0 = vector.load %arg2[%c0, %c0_0] : memref<8x16xf32, #tpu.memory_space<vmem>>, vector<8x16xf32>
    %c0_1 = arith.constant 0 : index
    %c0_2 = arith.constant 0 : index
    %1 = vector.load %arg3[%c0_1, %c0_2] : memref<16x16xf32, #tpu.memory_space<vmem>>, vector<16x16xf32>
    %cst = arith.constant dense<0.000000e+00> : vector<8x16xf32>
    %2 = tpu.matmul %0, %1, %cst {dimension_numbers = #tpu.dot_dimension_numbers<[1], [0], [0], [1], [0, 0, 1, 1], [], []>} : vector<8x16xf32>, vector<16x16xf32>, vector<8x16xf32> -> vector<8x16xf32>
    %3 = vector.extract_strided_slice %2 {offsets = [0, 15], sizes = [8, 1], strides = [1, 1]} : vector<8x16xf32> to vector<8x1xf32>
    %c0_3 = arith.constant 0 : index
    %c0_4 = arith.constant 0 : index
    %4 = vector.load %arg1[%c0_3, %c0_4] : memref<8x1xf32, #tpu.memory_space<vmem>>, vector<8x1xf32>
    %5 = arith.mulf %4, %3 : vector<8x1xf32>
    %6 = vector.broadcast %5 : vector<8x1xf32> to vector<8x16xf32>
    %7 = arith.cmpf olt, %2, %6 : vector<8x16xf32>
    %8 = arith.extui %7 : vector<8x16xi1> to vector<8x16xi32>
    %9 = arith.sitofp %8 : vector<8x16xi32> to vector<8x16xf32>
    %cst_5 = arith.constant dense<0.000000e+00> : vector<8xf32>
    %10 = vector.multi_reduction <add>, %9, %cst_5 [1] : vector<8x16xf32> to vector<8xf32>
    %11 = vector.shape_cast %10 : vector<8xf32> to vector<8x1xf32>
    %12 = arith.fptosi %11 : vector<8x1xf32> to vector<8x1xi32>
    %13 = tpu.iota {dimensions = array<i32: 1>} : vector<8x16xi32>
    %14 = vector.broadcast %12 : vector<8x1xi32> to vector<8x16xi32>
    %15 = arith.cmpi eq, %13, %14 : vector<8x16xi32>
    %cst_6 = arith.constant 1.000000e+00 : f32
    %cst_7 = arith.constant 0.000000e+00 : f32
    %16 = vector.broadcast %cst_6 : f32 to vector<8x16xf32>
    %17 = vector.broadcast %cst_7 : f32 to vector<8x16xf32>
    %18 = arith.select %15, %16, %17 : vector<8x16xi1>, vector<8x16xf32>
    %c0_8 = arith.constant 0 : index
    %c0_9 = arith.constant 0 : index
    %19 = vector.load %arg4[%c0_8, %c0_9] : memref<8x16xf32, #tpu.memory_space<vmem>>, vector<8x16xf32>
    tpu.vector_store %arg4[%c0_8, %c0_9], %18 {strides = array<i32>} : memref<8x16xf32, #tpu.memory_space<vmem>>, vector<8x16xf32>,
    return
  }
  func.func @transform_0(%arg0: i32) -> (i32, i32) {
    %c0_i32 = arith.constant 0 : i32
    %c0_i32_0 = arith.constant 0 : i32
    return %arg0, %c0_i32 : i32, i32
  }
  func.func @transform_1(%arg0: i32) -> (i32, i32) {
    %c0_i32 = arith.constant 0 : i32
    %c0_i32_0 = arith.constant 0 : i32
    return %arg0, %c0_i32 : i32, i32
  }
  func.func @transform_2(%arg0: i32) -> (i32, i32) {
    %c0_i32 = arith.constant 0 : i32
    %c0_i32_0 = arith.constant 0 : i32
    %c0_i32_1 = arith.constant 0 : i32
    return %c0_i32, %c0_i32_0 : i32, i32
  }
  func.func @transform_3(%arg0: i32) -> (i32, i32) {
    %c0_i32 = arith.constant 0 : i32
    %c0_i32_0 = arith.constant 0 : i32
    return %arg0, %c0_i32 : i32, i32
  }
}

</mosaic_0001>

<bundles_post_ra>
// kernel: tpu_custom_call.1
= control target key start
LH: loop header
LB: loop body
LE: loop exit
PB: predicated region body
PF: predicated region fallthrough
CT: control target
= control target key end

     0   :  { %8 = vsyncpa [#allocation3], 0  ;;  %s278_s0 = inlined_call_operand.vmem [shape: f32[8,1], index: 0, kind: input, shape index: {}]   ;;  %s279_s1 = inlined_call_operand.hbm [shape: f32[8,16], index: 1, kind: input, shape index: {}]   ;;  %s280_s2 = inlined_call_operand.vmem [shape: f32[16,16], index: 2, kind: input, shape index: {}]   ;;  %s281_s3 = inlined_call_operand.hbm [shape: f32[8,16], index: 3, kind: output, shape index: {}]  }
   0x1   :  { %9 = vsyncpa [#allocation4], 0  ;;  %s215_s12 = smov [#allocation2]   ;;  %s167_s16 = scalar_lea.hbm %s279_s1, 128 }
   0x2   :  { %s18_s13 = sshll.u32 %s215_s12, 4  ;;  %p168_p0 = scmp.ne.s32.totalorder %s279_s1, %s167_s16  ;;  %s19_s13 = int_to_ptr.vmem [resolvable:$true] %s18_s13 }
   0x3   :  { %p171_p1 = scmp.lt.u32.totalorder %s167_s16, %s279_s1 }
   0x5   :  { %p173_p2 = pnand %p171_p1, %p168_p0 }
   0x7   :  { %176 = shalt.err (!%p173_p2)
}
   0x8   :  { %s177_s21 = scalar_lea.vmem %s19_s13, 128  ;;  %p182_p4 = scmp.lt.s32.totalorder %s19_s13, %s19_s13 }
   0x9   :  { %p178_p3 = scmp.ne.s32.totalorder %s19_s13, %s177_s21  ;;  %p183_p5 = scmp.lt.s32.totalorder %s177_s21, %s177_s21 }
   0xb   :  { %p184_p6 = por %p183_p5, %p182_p4 }
   0xd   :  { %p185_p7 = pnand %p184_p6, %p178_p3 }
   0xf   :  { %188 = shalt.err (!%p185_p7)
}
  0x10   :  { %21 = dma.hbm_to_vmem [thread:$0]  %s279_s1, 128, %s19_s13, [#allocation3]  }
  0x11   :  { %211 = dma.done.wait [#allocation3], 128  }
  0x12   :  { %212 = vsyncadd [#allocation3], 4294967168  ;;  %v216_v0 = vmov 0.0|0.0   ;;  %vm217_vm0 = vmmov 0   ;;  %v218_v1 = vmov 0.0   ;;  %v28_v2 = vld [vmem:[%s280_s2] sm:$0xff]  ;;  %v122_v15 = vlaneseq }
  0x13   :  { %154 = vmatprep.subr.bf16.mxu0 %v216_v0  ;;  %151 = vmatprep.mubr.msk.f32.mxu0 %vm217_vm0, %v218_v1  ;;  %v29_v3 = vld [vmem:[%s280_s2 + $0x8] sm:$0xff]  ;;  %v27_v5 = vld [vmem:[#allocation2] sm:$0xff]  ;;  %vm30_vm1 = vcmask 130048   ;;  %v219_v6 = vmov 0   ;;  %s220_s1 = smov 113   ;;  %v104_v9 = vld [vmem:[%s278_s0] sm:$0xff] }
  0x14   :  { %v155_v4 = vpack.c.bf16 %v29_v3, %v28_v2  ;;  %166 = vset.pattern.permute.xlu0 %v219_v6  ;;  %v123_v17 = vand.u32 127, %v122_v15  ;;  %s221_s2 = smov [#allocation5]  }
  0x15   :  { %s133_s30 = sshll.u32 %s221_s2, 4  ;;  %s134_s30 = int_to_ptr.vmem [resolvable:$true] %s133_s30 }
  0x16   :  { %156 = vmatpush3.bf16.msra.mxu0 %v155_v4  ;;  %s189_s0 = scalar_lea.vmem %s134_s30, 128  ;;  %p194_p9 = scmp.lt.s32.totalorder %s134_s30, %s134_s30 }
  0x17   :  { %p190_p8 = scmp.ne.s32.totalorder %s134_s30, %s189_s0  ;;  %p195_p10 = scmp.lt.s32.totalorder %s189_s0, %s189_s0 }
  0x19   :  { %152 = vmatmul.mubr.msk.f32.vlgmr.msra.gmra.mrb[0].mxu0 %vm30_vm1, %v27_v5  ;;  %p196_p11 = por %p195_p10, %p194_p9 }
  0x1b   :  { %p197_p12 = pnand %p196_p11, %p190_p8 }
  0xec   :  { %v100_v7 = vpop.f32.mrb[0].mxu0 }
  0xed   :  { %106 = vrot.lane.b32.xlu0 %v100_v7, %s220_s1  ;;  %v153_v8 = vpop.f32.mrb[1].mxu0 }
 0x15f   :  { %v107_v10 = vpop.permute.xlu0 %106 }
 0x160   :  { %v109_v11 = vmul.f32 %v107_v10, %v104_v9 }
 0x162   :  { %112 = vperm.xlu0 %166, %v109_v11  }
 0x1e1   :  { %v113_v12 = vpop.permute.xlu0 %112 }
 0x1e2   :  { %vm115_vm2 = vcmp.lt.f32.partialorder %v100_v7, %v113_v12 }
 0x1e3   :  { %v143_v13 = vsel %vm115_vm2, 1.0, %v218_v1 }
 0x1e4   :  { %v118_v14 = vsel %vm30_vm1, %v143_v13, 0.0 }
 0x1e5   :  { %119 = vadd.xlane.f32.xlu1 %v118_v14 }
 0x272   :  { %v120_v16 = vpop.xlane.xlu1 %119 }
 0x273   :  { %v157_v18 = vtrunc.f32 %v120_v16 }
 0x275   :  { %v158_v19 = vcvt.f32.s32 %v157_v18 }
 0x277   :  { %vm124_vm3 = vcmp.eq.s32.totalorder %v123_v17, %v158_v19 }
 0x278   :  { %v125_v20 = vsel %vm124_vm3, 1.0, %v218_v1 }
 0x279   :  { %126 = vst.msk [vmem:[#allocation5] sm:$0xff] %vm30_vm1, %v125_v20 }
 0x27a   :  { %200 = shalt.err (!%p197_p12)
}
 0x27b   :  { %s201_s6 = scalar_lea.hbm %s281_s3, 128 }
 0x27c   :  { %p202_p13 = scmp.ne.s32.totalorder %s281_s3, %s201_s6  ;;  %p205_p0 = scmp.lt.u32.totalorder %s201_s6, %s281_s3 }
 0x27e   :  { %p207_p1 = pnand %p205_p0, %p202_p13 }
 0x280   :  { %210 = shalt.err (!%p207_p1)
}
 0x281   :  { %136 = dma.vmem_to_hbm [thread:$0]  %s134_s30, 128, %s281_s3, [#allocation4]  }
 0x282   :  { %213 = dma.done.wait [#allocation4], 128  }
 0x283   :  { %214 = vsyncadd [#allocation4], 4294967168 }
 0x284   :  { %140 = vsyncpa [#allocation3], 1 }
 0x285   :  { %141 = vsyncpa [#allocation4], 1 }

</bundles_post_ra>
